<compile_context>
chip_gen: v5e
topology: v5e:2x2
jax: 0.10.0
libtpu: 0.0.40
codegen_flags: <defaults>
</compile_context>

<pallas_src>
import functools

import numpy as np
import jax
import jax.numpy as jnp
from jax.experimental import pallas as pl
from jax.experimental.pallas import tpu as pltpu


VMEM_LIMIT = 32 * 1024 * 1024  # explicit scoped-VMEM budget (safe on v5e/v6e/v7x)


# ----------------------------------------------------------------------------
# nf() from the reference (defaults shrunk for the small synthetic test; the
# formula is identical: clip(fmap_base / 2**(stage*decay), fmap_min, fmap_max))
# ----------------------------------------------------------------------------
def nf(stage, fmap_base=64, fmap_decay=1.0, fmap_min=1, fmap_max=32):
    return int(np.clip(int(fmap_base / 2.0 ** (stage * fmap_decay)), fmap_min, fmap_max))


# ----------------------------------------------------------------------------
# Static 0/1 selection matrix: padded-flat low-res -> padded-flat high-res
# (interior extraction + nearest-2x upsample + zero re-padding in one matmul).
# ----------------------------------------------------------------------------
@functools.lru_cache(maxsize=None)
def _upsample_select_np(h, w):
    H, W = 2 * h, 2 * w
    wp_lo, wp_hi = w + 2, W + 2
    S = np.zeros(((H + 2) * wp_hi, (h + 2) * wp_lo), np.float32)
    for i in range(H):
        for j in range(W):
            S[(i + 1) * wp_hi + (j + 1), (i // 2 + 1) * wp_lo + (j // 2 + 1)] = 1.0
    return S


# ----------------------------------------------------------------------------
# In-kernel helpers (traced inside Pallas kernels)
# ----------------------------------------------------------------------------
def _channel_softmax(y):
    """Softmax over axis 0 (channels) of a (3, N) f32 tile."""
    m = jnp.max(y, axis=0, keepdims=True)
    e = jnp.exp(y - m)
    return e / jnp.sum(e, axis=0, keepdims=True)


def _conv3x3_on_padded_flat(xp, w9, b, *, H, W, leaky=True, pixel_norm=True,
                            out_dtype=jnp.bfloat16):
    """Fused 3x3 conv (pad=1) + bias [+LeakyReLU] [+PixelNorm] on one image.

    xp : (Npad, Cin) bf16  flat zero-padded NHWC image, Npad = (H+2)*(W+2)
    w9 : (9*Cin, Cout) bf16 tap-major packed weights
    b  : (1, Cout) f32
    returns (Npad, Cout) flat zero-padded output (border re-zeroed).
    """
    Wp = W + 2
    rows = H * Wp - 2                              # last 2 wrap entries dropped (OOB fix)
    # Nine shifted slices concatenated along lanes -> one K = 9*Cin MXU matmul.
    taps = [xp[dy * Wp + dx: dy * Wp + dx + rows, :]
            for dy in range(3) for dx in range(3)]
    patches = jnp.concatenate(taps, axis=-1)       # (rows, 9*Cin)
    y = jnp.dot(patches, w9, preferred_element_type=jnp.float32) + b
    if leaky:
        y = jnp.where(y >= 0.0, y, 0.2 * y)        # LeakyReLU(0.2)
    if pixel_norm:
        # PixelwiseNorm: x / sqrt(mean(x^2, channel) + 1e-8)
        y = y * jax.lax.rsqrt(jnp.mean(y * y, axis=-1, keepdims=True) + 1e-8)

    # Zero the wrapped (garbage) columns; they land exactly on border positions
    # of the padded output, so the assembled result keeps a clean zero border.
    col = jax.lax.rem(jax.lax.broadcasted_iota(jnp.int32, (rows, 1), 0), Wp)
    y = jnp.where(col < W, y, 0.0).astype(out_dtype)

    zpad = jnp.zeros((Wp + 1, y.shape[-1]), out_dtype)
    return jnp.concatenate([zpad, y, zpad], axis=0)  # (Npad, Cout)


# ----------------------------------------------------------------------------
# Pallas kernels
# ----------------------------------------------------------------------------
def _dense_lrelu_kernel(z_ref, w_ref, b_ref, o_ref):
    """ConvTranspose(4x4 on 1x1 input) == dense: z @ W + b, LeakyReLU(0.2)."""
    y = jnp.dot(z_ref[...], w_ref[...], preferred_element_type=jnp.float32)
    y = y + b_ref[...]
    y = jnp.where(y >= 0.0, y, 0.2 * y)
    o_ref[...] = y.astype(o_ref.dtype)


def _init_conv_kernel(x_ref, w_ref, b_ref, o_ref, *, H, W):
    """Initial-block 3x3 conv + LeakyReLU + PixelNorm on one padded image."""
    o_ref[0] = _conv3x3_on_padded_flat(x_ref[0], w_ref[...], b_ref[...],
                                       H=H, W=W, leaky=True, pixel_norm=True)


def _block_kernel(x_ref, s_ref, w1_ref, b1_ref, w2_ref, b2_ref, o_ref, *, H, W):
    """Fused GenGeneralConvBlock: upsample2x + (conv3x3+LReLU+PixNorm) x2.

    x_ref : (1, npad_lo, Cin) bf16 padded-flat low-res features
    s_ref : (Npad_hi, npad_lo) bf16 static 0/1 upsample selection matrix
    o_ref : (1, Npad_hi, Cout) bf16 padded-flat high-res output
    Intermediates (upsampled map, mid features) never leave VMEM/vregs.
    """
    up = jnp.dot(s_ref[...], x_ref[0],
                 preferred_element_type=jnp.float32).astype(jnp.bfloat16)
    mid = _conv3x3_on_padded_flat(up, w1_ref[...], b1_ref[...], H=H, W=W)
    out = _conv3x3_on_padded_flat(mid, w2_ref[...], b2_ref[...], H=H, W=W)
    o_ref[0] = out


def _rgb_blend_softmax_kernel(alpha_ref, s_ref, xlo_ref, st_ref,
                              ws_ref, bs_ref, wr_ref, br_ref, o_ref):
    """Fused fade-in stage: to_rgb(straight) + to_rgb(low-res)->upsample,
    alpha blend, channel softmax.  Computes in (3, Npad) lane-dense layout."""
    a = alpha_ref[0]
    dn = (((1,), (1,)), ((), ()))                                 # A @ B^T
    ys = jax.lax.dot_general(ws_ref[...], s_ref[0], dn,
                             preferred_element_type=jnp.float32) + bs_ref[...]
    yr_lo = jax.lax.dot_general(wr_ref[...], xlo_ref[0], dn,
                                preferred_element_type=jnp.float32) + br_ref[...]
    # Nearest-2x upsample of the 3-channel residual via the selection matrix
    # (exactly the reference order: rgb first, then interpolate).
    yr = jnp.dot(yr_lo, st_ref[...], preferred_element_type=jnp.float32)
    y = a * ys + (1.0 - a) * yr                                   # (3, Npad_hi)
    o_ref[0] = _channel_softmax(y)                                # lane-dense store


def _rgb_softmax_kernel(s_ref, ws_ref, bs_ref, o_ref):
    """depth==2 path: to_rgb + channel softmax, lane-dense (3, Npad) store."""
    dn = (((1,), (1,)), ((), ()))
    y = jax.lax.dot_general(ws_ref[...], s_ref[0], dn,
                            preferred_element_type=jnp.float32) + bs_ref[...]
    o_ref[0] = _channel_softmax(y)


# ----------------------------------------------------------------------------
# Pallas wrappers
# ----------------------------------------------------------------------------
def dense_lrelu(z, w, b):
    B, L = z.shape
    N = w.shape[1]
    cost = pl.CostEstimate(
        flops=int(2 * B * L * N), transcendentals=0,
        bytes_accessed=int(z.size * 2 + w.size * 2 + b.size * 4 + B * N * 2))
    return pl.pallas_call(
        _dense_lrelu_kernel,
        out_shape=jax.ShapeDtypeStruct((B, N), jnp.bfloat16),
        compiler_params=pltpu.CompilerParams(vmem_limit_bytes=VMEM_LIMIT),
        cost_estimate=cost,
    )(z, w, b)


def init_conv(x, w9, b, *, H, W):
    B, npad, cin = x.shape
    cout = w9.shape[1]
    rows = H * (W + 2) - 2
    kern = functools.partial(_init_conv_kernel, H=H, W=W)
    cost = pl.CostEstimate(
        flops=int(2 * B * rows * 9 * cin * cout),
        transcendentals=int(B * rows),
        bytes_accessed=int(x.size * 2 + w9.size * 2 + b.size * 4 + B * npad * cout * 2))
    return pl.pallas_call(
        kern,
        out_shape=jax.ShapeDtypeStruct((B, npad, cout), jnp.bfloat16),
        grid=(B,),
        in_specs=[
            pl.BlockSpec((1, npad, cin), lambda i: (i, 0, 0)),
            pl.BlockSpec((9 * cin, cout), lambda i: (0, 0)),      # resident
            pl.BlockSpec((1, cout), lambda i: (0, 0)),            # resident
        ],
        out_specs=pl.BlockSpec((1, npad, cout), lambda i: (i, 0, 0)),
        compiler_params=pltpu.CompilerParams(
            dimension_semantics=("parallel",), vmem_limit_bytes=VMEM_LIMIT),
        cost_estimate=cost,
    )(x, w9, b)


def gen_block(x, S, w1, b1, w2, b2, *, H, W):
    """x: (B, (H/2+2)*(W/2+2), Cin) padded-flat low-res; H, W = output dims."""
    B, npad_lo, cin = x.shape
    cmid = w1.shape[1]
    cout = w2.shape[1]
    npad_hi = (H + 2) * (W + 2)
    rows = H * (W + 2) - 2
    kern = functools.partial(_block_kernel, H=H, W=W)
    cost = pl.CostEstimate(
        flops=int(2 * B * (npad_hi * npad_lo * cin
                           + rows * 9 * cin * cmid + rows * 9 * cmid * cout)),
        transcendentals=int(2 * B * rows),
        bytes_accessed=int(x.size * 2 + S.size * 2 + w1.size * 2 + w2.size * 2
                           + (b1.size + b2.size) * 4 + B * npad_hi * cout * 2))
    return pl.pallas_call(
        kern,
        out_shape=jax.ShapeDtypeStruct((B, npad_hi, cout), jnp.bfloat16),
        grid=(B,),
        in_specs=[
            pl.BlockSpec((1, npad_lo, cin), lambda i: (i, 0, 0)),
            pl.BlockSpec((npad_hi, npad_lo), lambda i: (0, 0)),   # resident
            pl.BlockSpec((9 * cin, cmid), lambda i: (0, 0)),
            pl.BlockSpec((1, cmid), lambda i: (0, 0)),
            pl.BlockSpec((9 * cmid, cout), lambda i: (0, 0)),
            pl.BlockSpec((1, cout), lambda i: (0, 0)),
        ],
        out_specs=pl.BlockSpec((1, npad_hi, cout), lambda i: (i, 0, 0)),
        compiler_params=pltpu.CompilerParams(
            dimension_semantics=("parallel",), vmem_limit_bytes=VMEM_LIMIT),
        cost_estimate=cost,
    )(x, S, w1, b1, w2, b2)


def rgb_blend_softmax(straight, low, ws, bs, wr, br, alpha, St, *, H, W):
    B, npad_hi, cs = straight.shape
    npad_lo, cr = low.shape[1], low.shape[2]
    a = jnp.asarray([alpha], jnp.float32)
    cost = pl.CostEstimate(
        flops=int(2 * B * (3 * cs * npad_hi + 3 * cr * npad_lo
                           + 3 * npad_lo * npad_hi) + 12 * B * npad_hi),
        transcendentals=int(3 * B * npad_hi),
        bytes_accessed=int(straight.size * 2 + low.size * 2 + St.size * 4
                           + (ws.size + wr.size) * 2 + (bs.size + br.size) * 4
                           + B * 3 * npad_hi * 4))
    return pl.pallas_call(
        _rgb_blend_softmax_kernel,
        out_shape=jax.ShapeDtypeStruct((B, 3, npad_hi), jnp.float32),
        grid=(B,),
        in_specs=[
            pl.BlockSpec(memory_space=pltpu.MemorySpace.SMEM),    # alpha
            pl.BlockSpec((1, npad_hi, cs), lambda i: (i, 0, 0)),
            pl.BlockSpec((1, npad_lo, cr), lambda i: (i, 0, 0)),
            pl.BlockSpec((npad_lo, npad_hi), lambda i: (0, 0)),   # upsample^T
            pl.BlockSpec((3, cs), lambda i: (0, 0)),
            pl.BlockSpec((3, 1), lambda i: (0, 0)),
            pl.BlockSpec((3, cr), lambda i: (0, 0)),
            pl.BlockSpec((3, 1), lambda i: (0, 0)),
        ],
        out_specs=pl.BlockSpec((1, 3, npad_hi), lambda i: (i, 0, 0)),
        compiler_params=pltpu.CompilerParams(
            dimension_semantics=("parallel",), vmem_limit_bytes=VMEM_LIMIT),
        cost_estimate=cost,
    )(a, straight, low, St, ws, bs, wr, br)


def rgb_softmax(feat, w, b, *, H, W):
    B, npad, c = feat.shape
    cost = pl.CostEstimate(
        flops=int(2 * B * 3 * c * npad + 8 * B * npad),
        transcendentals=int(3 * B * npad),
        bytes_accessed=int(feat.size * 2 + w.size * 2 + b.size * 4 + B * 3 * npad * 4))
    return pl.pallas_call(
        _rgb_softmax_kernel,
        out_shape=jax.ShapeDtypeStruct((B, 3, npad), jnp.float32),
        grid=(B,),
        in_specs=[
            pl.BlockSpec((1, npad, c), lambda i: (i, 0, 0)),
            pl.BlockSpec((3, c), lambda i: (0, 0)),
            pl.BlockSpec((3, 1), lambda i: (0, 0)),
        ],
        out_specs=pl.BlockSpec((1, 3, npad), lambda i: (i, 0, 0)),
        compiler_params=pltpu.CompilerParams(
            dimension_semantics=("parallel",), vmem_limit_bytes=VMEM_LIMIT),
        cost_estimate=cost,
    )(feat, w, b)


# ----------------------------------------------------------------------------
# Plain-JAX glue (layout plumbing only; tiny, single materialisation each)
# ----------------------------------------------------------------------------
def nhwc_to_flat_padded(x):
    """NHWC (B,H,W,C) -> flat padded (B,(H+2)*(W+2),C), zero border."""
    B, H, W, C = x.shape
    xp = jnp.pad(x, ((0, 0), (1, 1), (1, 1), (0, 0)))
    return xp.reshape(B, (H + 2) * (W + 2), C)


def crop_rgb_to_nchw(out, H, W):
    """(B, 3, (H+2)*(W+2)) padded-flat -> (B, 3, H, W) NCHW."""
    B = out.shape[0]
    return out.reshape(B, 3, H + 2, W + 2)[:, :, 1:H + 1, 1:W + 1]


# ----------------------------------------------------------------------------
# Parameter construction (deterministic, equalized-LR scale folded in, bf16)
# ----------------------------------------------------------------------------
def init_generator_params(key, depth=4, n_channels=3, latent_size=32):
    keys = iter(jax.random.split(key, 8 * depth))

    def nrm(shape):
        return jax.random.normal(next(keys), shape, jnp.float32)

    c1 = nf(1)
    # GenInitialBlock: ConvTranspose2d(latent, c1, 4x4) on 1x1 input == dense.
    ct_w = nrm((latent_size, c1, 4, 4)) * np.sqrt(2.0 / latent_size)
    ct_w = jnp.transpose(ct_w, (0, 2, 3, 1)).reshape(latent_size, 16 * c1)  # (L, i*j*co)
    ct_b = jnp.tile(0.1 * nrm((c1,)), 16).reshape(1, 16 * c1)               # per-channel bias
    ic2_w = nrm((c1, c1, 3, 3)) * np.sqrt(2.0 / (c1 * 9))                   # (Cout,Cin,3,3)
    params = {"initial": dict(
        ct_w=ct_w.astype(jnp.bfloat16),
        ct_b=ct_b.astype(jnp.float32),
        c2_w=jnp.transpose(ic2_w, (2, 3, 1, 0)).reshape(9 * c1, c1).astype(jnp.bfloat16),
        c2_b=(0.1 * nrm((1, c1))).astype(jnp.float32),
        cout=c1,
    )}

    blocks = []
    for stage in range(1, depth - 1):
        cin, cout = nf(stage), nf(stage + 1)
        w1 = nrm((cout, cin, 3, 3)) * np.sqrt(2.0 / (cin * 9))
        w2 = nrm((cout, cout, 3, 3)) * np.sqrt(2.0 / (cout * 9))
        blocks.append(dict(
            c1_w=jnp.transpose(w1, (2, 3, 1, 0)).reshape(9 * cin, cout).astype(jnp.bfloat16),
            c1_b=(0.1 * nrm((1, cout))).astype(jnp.float32),
            c2_w=jnp.transpose(w2, (2, 3, 1, 0)).reshape(9 * cout, cout).astype(jnp.bfloat16),
            c2_b=(0.1 * nrm((1, cout))).astype(jnp.float32),
        ))
    params["blocks"] = blocks

    rgbs = []
    for stage in range(1, depth):
        cin = nf(stage)
        w = nrm((n_channels, cin, 1, 1)) * np.sqrt(2.0 / cin)
        rgbs.append(dict(w=w[:, :, 0, 0].astype(jnp.bfloat16),      # (3, Cin)
                         b=(0.1 * nrm((n_channels, 1))).astype(jnp.float32)))
    params["rgb"] = rgbs
    return params


# ----------------------------------------------------------------------------
# Generator.forward (Pallas pipeline)
# ----------------------------------------------------------------------------
def generator_forward(params, x, labels, out_depth, alpha, net_depth):
    assert labels is None  # TODO(synk): conditional path not implemented
    assert out_depth <= net_depth, "Requested output depth cannot be produced"

    B = x.shape[0]
    p0 = params["initial"]
    c1 = p0["cout"]

    # --- GenInitialBlock: ConvT4x4 -> LReLU, Conv3x3 -> LReLU -> PixelNorm ---
    d = dense_lrelu(x.astype(jnp.bfloat16), p0["ct_w"], p0["ct_b"])   # (B, 16*c1)
    y = nhwc_to_flat_padded(d.reshape(B, 4, 4, c1))                   # (B, 36, c1)
    y = init_conv(y, p0["c2_w"], p0["c2_b"], H=4, W=4)
    H = W = 4

    if out_depth == 2:
        pr = params["rgb"][0]
        out = rgb_softmax(y, pr["w"], pr["b"], H=H, W=W)              # (B, 3, 36)
        return crop_rgb_to_nchw(out, H, W)

    # --- intermediate fused blocks: up2x + conv3x3 x2 (one pallas_call each) ---
    for i in range(out_depth - 3):
        blk = params["blocks"][i]
        S = jnp.asarray(_upsample_select_np(H, W), jnp.bfloat16)
        y = gen_block(y, S, blk["c1_w"], blk["c1_b"], blk["c2_w"], blk["c2_b"],
                      H=2 * H, W=2 * W)
        H, W = 2 * H, 2 * W

    # --- fade-in stage: final block + both to_rgb + blend + softmax ----------
    blk = params["blocks"][out_depth - 3]
    Snp = _upsample_select_np(H, W)
    s = gen_block(y, jnp.asarray(Snp, jnp.bfloat16),
                  blk["c1_w"], blk["c1_b"], blk["c2_w"], blk["c2_b"],
                  H=2 * H, W=2 * W)
    pr_s = params["rgb"][out_depth - 2]
    pr_r = params["rgb"][out_depth - 3]
    out = rgb_blend_softmax(s, y, pr_s["w"], pr_s["b"], pr_r["w"], pr_r["b"],
                            alpha, jnp.asarray(Snp.T, jnp.float32),
                            H=2 * H, W=2 * W)                         # (B,3,Npad)
    return crop_rgb_to_nchw(out, 2 * H, 2 * W)                        # NCHW


# ----------------------------------------------------------------------------
# Pure-JAX f32 reference (same packed parameters) for tolerance checks
# ----------------------------------------------------------------------------
def reference_forward(params, x, out_depth, alpha):
    f32 = jnp.float32

    def lrelu(v):
        return jnp.where(v >= 0, v, 0.2 * v)

    def pixnorm(v):
        return v * jax.lax.rsqrt(jnp.mean(v * v, axis=-1, keepdims=True) + 1e-8)

    def conv3x3(v, w9, b):
        cout = w9.shape[1]
        cin = w9.shape[0] // 9
        w = w9.astype(f32).reshape(3, 3, cin, cout)                   # HWIO
        y = jax.lax.conv_general_dilated(
            v, w, (1, 1), "SAME", dimension_numbers=("NHWC", "HWIO", "NHWC"))
        return y + b.astype(f32).reshape(1, 1, 1, cout)

    def rgb(v, p):
        return (jnp.einsum("bhwc,oc->bhwo", v, p["w"].astype(f32))
                + p["b"].astype(f32).reshape(1, 1, 1, -1))

    def up2(v):
        return jnp.repeat(jnp.repeat(v, 2, axis=1), 2, axis=2)

    B = x.shape[0]
    p0 = params["initial"]
    c1 = p0["cout"]
    d = lrelu(x.astype(f32) @ p0["ct_w"].astype(f32) + p0["ct_b"].astype(f32))
    y = d.reshape(B, 4, 4, c1)
    y = pixnorm(lrelu(conv3x3(y, p0["c2_w"], p0["c2_b"])))

    if out_depth == 2:
        out = rgb(y, params["rgb"][0])
    else:
        for i in range(out_depth - 3):
            blk = params["blocks"][i]
            y = up2(y)
            y = pixnorm(lrelu(conv3x3(y, blk["c1_w"], blk["c1_b"])))
            y = pixnorm(lrelu(conv3x3(y, blk["c2_w"], blk["c2_b"])))
        residual = up2(rgb(y, params["rgb"][out_depth - 3]))
        blk = params["blocks"][out_depth - 3]
        s = up2(y)
        s = pixnorm(lrelu(conv3x3(s, blk["c1_w"], blk["c1_b"])))
        s = pixnorm(lrelu(conv3x3(s, blk["c2_w"], blk["c2_b"])))
        straight = rgb(s, params["rgb"][out_depth - 2])
        out = alpha * straight + (1.0 - alpha) * residual

    return jnp.transpose(jax.nn.softmax(out, axis=-1), (0, 3, 1, 2))  # NCHW


# ----------------------------------------------------------------------------
if __name__ == "__main__":
    key = jax.random.PRNGKey(0)
    kp, kx = jax.random.split(key)

    NET_DEPTH, LATENT, N_CHANNELS, BATCH = 4, 32, 3, 2
    params = init_generator_params(kp, depth=NET_DEPTH, n_channels=N_CHANNELS,
                                   latent_size=LATENT)
    x = jax.random.normal(kx, (BATCH, LATENT), jnp.float32)

    # full-depth fade-in path (alpha blend of straight + upsampled residual)
    out = generator_forward(params, x, None, out_depth=NET_DEPTH, alpha=0.5,
                            net_depth=NET_DEPTH)
    out = jax.block_until_ready(out)
    assert out.shape == (BATCH, N_CHANNELS, 16, 16), out.shape
    ref = reference_forward(params, x, out_depth=NET_DEPTH, alpha=0.5)
    assert np.allclose(np.asarray(out), np.asarray(ref), atol=5e-2), \
        float(np.max(np.abs(np.asarray(out) - np.asarray(ref))))
    assert np.allclose(np.asarray(out).sum(axis=1), 1.0, atol=1e-3)

    # depth == 2 path (initial block only)
    out2 = jax.block_until_ready(
        generator_forward(params, x, None, out_depth=2, alpha=1.0,
                          net_depth=NET_DEPTH))
    assert out2.shape == (BATCH, N_CHANNELS, 4, 4), out2.shape
    ref2 = reference_forward(params, x, out_depth=2, alpha=1.0)
    assert np.allclose(np.asarray(out2), np.asarray(ref2), atol=5e-2), \
        float(np.max(np.abs(np.asarray(out2) - np.asarray(ref2))))
    assert np.allclose(np.asarray(out2).sum(axis=1), 1.0, atol=1e-3)

    print("KERNEL_OK")
</pallas_src>

<mosaic_0001>
module attributes {stable_mosaic.version = 11 : i64} {
  func.func @_dense_lrelu_kernel(%arg0: memref<2x32xbf16, #tpu.memory_space<vmem>>, %arg1: memref<32x512xbf16, #tpu.memory_space<vmem>>, %arg2: memref<1x512xf32, #tpu.memory_space<vmem>>, %arg3: memref<2x512xbf16, #tpu.memory_space<vmem>>) attributes {dimension_semantics = [], scalar_prefetch = 0 : i64, scratch_operands = 0 : i64, tpu.core_type = #tpu.core_type<tc>} {
    %c0 = arith.constant 0 : index
    %c0_0 = arith.constant 0 : index
    %0 = vector.load %arg0[%c0, %c0_0] : memref<2x32xbf16, #tpu.memory_space<vmem>>, vector<2x32xbf16>
    %c0_1 = arith.constant 0 : index
    %c0_2 = arith.constant 0 : index
    %1 = vector.load %arg1[%c0_1, %c0_2] : memref<32x512xbf16, #tpu.memory_space<vmem>>, vector<32x512xbf16>
    %cst = arith.constant dense<0.000000e+00> : vector<2x512xf32>
    %2 = tpu.matmul %0, %1, %cst {dimension_numbers = #tpu.dot_dimension_numbers<[1], [0], [0], [1], [0, 0, 1, 1], [], []>} : vector<2x32xbf16>, vector<32x512xbf16>, vector<2x512xf32> -> vector<2x512xf32>
    %c0_3 = arith.constant 0 : index
    %c0_4 = arith.constant 0 : index
    %3 = vector.load %arg2[%c0_3, %c0_4] : memref<1x512xf32, #tpu.memory_space<vmem>>, vector<1x512xf32>
    %4 = vector.broadcast %3 : vector<1x512xf32> to vector<2x512xf32>
    %5 = arith.addf %2, %4 : vector<2x512xf32>
    %cst_5 = arith.constant 0.000000e+00 : f32
    %6 = vector.broadcast %cst_5 : f32 to vector<2x512xf32>
    %7 = arith.cmpf oge, %5, %6 : vector<2x512xf32>
    %cst_6 = arith.constant 2.000000e-01 : f32
    %8 = vector.broadcast %cst_6 : f32 to vector<2x512xf32>
    %9 = arith.mulf %8, %5 : vector<2x512xf32>
    %10 = arith.select %7, %5, %9 : vector<2x512xi1>, vector<2x512xf32>
    %11 = arith.truncf %10 : vector<2x512xf32> to vector<2x512xbf16>
    %c0_7 = arith.constant 0 : index
    %c0_8 = arith.constant 0 : index
    %12 = vector.load %arg3[%c0_7, %c0_8] : memref<2x512xbf16, #tpu.memory_space<vmem>>, vector<2x512xbf16>
    tpu.vector_store %arg3[%c0_7, %c0_8], %11 {strides = array<i32>} : memref<2x512xbf16, #tpu.memory_space<vmem>>, vector<2x512xbf16>,
    return
  }
}

</mosaic_0001>

<bundles_post_ra>
// kernel: tpu_custom_call.1
= control target key start
LH: loop header
LB: loop body
LE: loop exit
PB: predicated region body
PF: predicated region fallthrough
CT: control target
= control target key end

     0   :  { %8 = vsyncpa [#allocation3], 0  ;;  %s413_s0 = inlined_call_operand.hbm [shape: bf16[2,32], index: 0, kind: input, shape index: {}]   ;;  %s414_s1 = inlined_call_operand.hbm [shape: bf16[32,512], index: 1, kind: input, shape index: {}]   ;;  %s415_s2 = inlined_call_operand.hbm [shape: f32[1,512], index: 2, kind: input, shape index: {}]   ;;  %s416_s3 = inlined_call_operand.hbm [shape: bf16[2,512], index: 3, kind: output, shape index: {}]  }
   0x1   :  { %9 = vsyncpa [#allocation6], 0  ;;  %s26_s14 = sshll.u32 %s414_s1, 4  ;;  %s27_s14 = int_to_ptr.hbm [resolvable:$true] %s26_s14 }
   0x2   :  { %10 = vsyncpa [#allocation4], 0  ;;  %s375_s15 = smov [#allocation5]   ;;  %s16_s19 = sshll.u32 %s413_s0, 4  ;;  %s17_s19 = int_to_ptr.hbm [resolvable:$true] %s16_s19 }
   0x3   :  { %s28_s16 = sshll.u32 %s375_s15, 4  ;;  %s376_s20 = smov 256   ;;  %s29_s16 = int_to_ptr.vmem [resolvable:$true] %s28_s16 }
   0x4   :  { %s377_s21 = smov 16   ;;  %s378_s22 = smov [#allocation2]  }
   0x5   :  { %34 = dma.hbm_to_vmem [thread:$0]  %s27_s14, 1024, %s29_s16, [#allocation6], %s376_s20, %s376_s20, %s377_s21  }
   0x6   :  { %s18_s23 = sshll.u32 %s378_s22, 4  ;;  %s40_s26 = sshll.u32 %s415_s2, 4  ;;  %s19_s23 = int_to_ptr.vmem [resolvable:$true] %s18_s23  ;;  %s41_s26 = int_to_ptr.hbm [resolvable:$true] %s40_s26 }
   0x7   :  { %21 = dma.hbm_to_vmem [thread:$0]  %s17_s19, 16, %s19_s23, [#allocation3]  }
   0x8   :  { %s379_s1 = smov [#allocation7]  }
   0x9   :  { %s42_s27 = sshll.u32 %s379_s1, 4  ;;  %s43_s27 = int_to_ptr.vmem [resolvable:$true] %s42_s27 }
   0xa   :  { %45 = dma.hbm_to_vmem [thread:$0]  %s41_s26, 64, %s43_s27, [#allocation6]  }
   0xb   :  { %369 = dma.done.wait [#allocation3], 16  }
   0xc   :  { %370 = vsyncadd [#allocation3], 4294967280 }
   0xd   :  { %371 = dma.done.wait [#allocation6], 1088  }
   0xe   :  { %372 = vsyncadd [#allocation6], 4294966208  ;;  %v241_v0 = vld [vmem:[#allocation5 + $0x20] sm:$0xf]  ;;  %v265_v1 = vld [vmem:[#allocation5 + $0x2c] sm:$0xf0] }
   0xf   :  { %v263_v2 = vld [vmem:[#allocation5 + $0x24] sm:$0xf]  ;;  %v242_v3 = vor.u32 %v265_v1, %v241_v0  ;;  %v243_v4 = vld [vmem:[#allocation5 + $0x30] sm:$0xf0]  ;;  %v249_v5 = vld [vmem:[#allocation5 + $0x28] sm:$0xf] }
  0x10   :  { %v266_v6 = vld [vmem:[#allocation5 + $0x34] sm:$0xf0]  ;;  %v246_v7 = vor.u32 %v263_v2, %v243_v4  ;;  %v264_v9 = vld [vmem:[#allocation5 + $0x2c] sm:$0xf]  ;;  %v251_v10 = vld [vmem:[#allocation5 + $0x38] sm:$0xf0] }
  0x11   :  { %v250_v8 = vor.u32 %v266_v6, %v249_v5  ;;  %v225_v11 = vld [vmem:[#allocation5] sm:$0xf]  ;;  %128 = vmatpush.bf16.msra.mxu0 %v242_v3  ;;  %v254_v12 = vor.u32 %v264_v9, %v251_v10  ;;  %v261_v13 = vld [vmem:[#allocation5 + $0xc] sm:$0xf0]  ;;  %v259_v14 = vld [vmem:[#allocation5 + $0x4] sm:$0xf] }
  0x12   :  { %v227_v15 = vld [vmem:[#allocation5 + $0x10] sm:$0xf0]  ;;  %141 = vmatpush.bf16.msra.mxu1 %v246_v7  ;;  %v226_v16 = vor.u32 %v261_v13, %v225_v11  ;;  %v233_v18 = vld [vmem:[#allocation5 + $0x8] sm:$0xf]  ;;  %v262_v19 = vld [vmem:[#allocation5 + $0x14] sm:$0xf0] }
  0x13   :  { %154 = vmatpush.bf16.msra.mxu2 %v250_v8  ;;  %v230_v17 = vor.u32 %v259_v14, %v227_v15  ;;  %v260_v20 = vld [vmem:[#allocation5 + $0xc] sm:$0xf]  ;;  %167 = vmatpush.bf16.msra.mxu3 %v254_v12  ;;  %v234_v21 = vor.u32 %v262_v19, %v233_v18  ;;  %v235_v22 = vld [vmem:[#allocation5 + $0x18] sm:$0xf0]  ;;  %vm118_vm0 = vcmask 261120   ;;  %vm193_vm5 = vcmask 1040384  }
  0x14   :  { %v238_v23 = vor.u32 %v260_v20, %v235_v22  ;;  %v59_v24 = vld [vmem:[#allocation2] sm:$0x1]  ;;  %v68_v25 = vld [vmem:[#allocation7] sm:$0xf]  ;;  %vm197_vm6 = vcmask 1042434   ;;  %s380_s0 = smov [#allocation8]  }
  0x15   :  { %129 = vmatpush.bf16.msra.mxu0 %v226_v16  ;;  %v70_v26 = vperm.slane %v68_v25, 0  ;;  %v71_v27 = vperm.slane %v68_v25, 1  ;;  %v72_v34 = vperm.slane %v68_v25, 2  ;;  %v73_v35 = vperm.slane %v68_v25, 3  ;;  %s210_s2 = sshll.u32 %s380_s0, 4  ;;  %s212_s30 = sshll.u32 %s416_s3, 4  ;;  %s211_s2 = int_to_ptr.vmem [resolvable:$true] %s210_s2  ;;  %s213_s30 = int_to_ptr.hbm [resolvable:$true] %s212_s30 }
  0x16   :  { %142 = vmatpush.bf16.msra.mxu1 %v230_v17  ;;  %vm201_vm7 = vcmask 1041408  }
  0x17   :  { %155 = vmatpush.bf16.msra.mxu2 %v234_v21  ;;  %168 = vmatpush.bf16.msra.mxu3 %v238_v23 }
  0x18   :  { %255 = vmatmul.msk.bf16.vlgmr.msra.gmra.mxu0 %vm118_vm0, %v59_v24 }
  0x19   :  { %256 = vmatmul.msk.bf16.vlgmr.msra.gmra.mxu1 %vm118_vm0, %v59_v24 }
  0x1a   :  { %257 = vmatmul.msk.bf16.vlgmr.msra.gmra.mxu2 %vm118_vm0, %v59_v24  ;;  %258 = vmatmul.msk.bf16.vlgmr.msra.gmra.mxu3 %vm118_vm0, %v59_v24 }
  0x95   :  { %v131_v28 = vpop.f32.mrf.mxu0 }
  0x96   :  { %v132_v29 = vadd.f32 %v131_v28, %v70_v26  ;;  %v144_v30 = vpop.f32.mrf.mxu1 }
  0x97   :  { %v145_v31 = vadd.f32 %v144_v30, %v71_v27 }
  0x98   :  { %v178_v32 = vmul.f32 0.2, %v132_v29  ;;  %vm174_vm1 = vcmp.ge.f32.partialorder %v132_v29, 0.0 }
  0x99   :  { %vm175_vm2 = vcmp.ge.f32.partialorder %v145_v31, 0.0  ;;  %v179_v33 = vmul.f32 0.2, %v145_v31 }
  0x9a   :  { %v182_v36 = vsel %vm174_vm1, %v132_v29, %v178_v32 }
  0x9b   :  { %v183_v37 = vsel %vm175_vm2, %v145_v31, %v179_v33 }
  0x9c   :  { %v186_v44 = vpack.c.bf16 %v183_v37, %v182_v36 }
  0x9d   :  { %v157_v38 = vpop.f32.mrf.mxu2  ;;  %v170_v40 = vpop.f32.mrf.mxu3 }
  0x9e   :  { %v158_v39 = vadd.f32 %v157_v38, %v72_v34  ;;  %v133_v41 = vpop.f32.mrf.mxu0  ;;  %v171_v42 = vadd.f32 %v170_v40, %v73_v35  ;;  %v146_v43 = vpop.f32.mrf.mxu1  ;;  %v190_v49 = vrot.slane %v186_v44, 3 }
  0xa0   :  { %vm176_vm3 = vcmp.ge.f32.partialorder %v158_v39, 0.0  ;;  %v180_v45 = vmul.f32 0.2, %v158_v39  ;;  %vm177_vm4 = vcmp.ge.f32.partialorder %v171_v42, 0.0  ;;  %v181_v46 = vmul.f32 0.2, %v171_v42 }
  0xa1   :  { %v196_v55 = vsel %vm193_vm5, %v186_v44, %v190_v49 }
  0xa2   :  { %v184_v47 = vsel %vm176_vm3, %v158_v39, %v180_v45  ;;  %v185_v48 = vsel %vm177_vm4, %v171_v42, %v181_v46 }
  0xa3   :  { %v187_v50 = vpack.c.bf16 %v185_v48, %v184_v47 }
  0xa5   :  { %v159_v51 = vpop.f32.mrf.mxu2  ;;  %v191_v52 = vrot.slane %v187_v50, 6  ;;  %v192_v53 = vrot.slane %v187_v50, 1  ;;  %v172_v54 = vpop.f32.mrf.mxu3 }
  0xa7   :  { %v200_v56 = vsel %vm197_vm6, %v191_v52, %v192_v53 }
  0xa8   :  { %v202_v57 = vsel %vm201_vm7, %v196_v55, %v200_v56 }
  0xa9   :  { %204 = vst [vmem:[#allocation8] sm:$0xf] %v202_v57 }
  0xaa   :  { %215 = dma.vmem_to_hbm [thread:$0]  %s211_s2, 64, %s213_s30, [#allocation4]  }
  0xab   :  { %373 = dma.done.wait [#allocation4], 64  }
  0xac   :  { %374 = vsyncadd [#allocation4], 4294967232 }
  0xad   :  { %220 = vsyncpa [#allocation3], 1 }
  0xae   :  { %221 = vsyncpa [#allocation6], 1 }
  0xaf   :  { %222 = vsyncpa [#allocation4], 1 }

</bundles_post_ra>
